<compile_context>
chip_gen: v6e
topology: v6e:2x2x1
jax: 0.10.0
libtpu: 0.0.40
codegen_flags: <defaults>
</compile_context>

<pallas_src>
import functools

import jax
import jax.numpy as jnp
from jax import lax
from jax.experimental import pallas as pl
from jax.experimental.pallas import tpu as pltpu

_BN_EPS = 1e-5
_INV_SQRT2 = 0.7071067811865476


def _erf_poly(x):
    # Abramowitz & Stegun 7.1.26 rational erf approximation (|err| <= 1.5e-7),
    # built only from ops that lower on Mosaic (exp, mul, add, where, divide).
    a1, a2, a3, a4, a5 = (0.254829592, -0.284496736, 1.421413741,
                          -1.453152027, 1.061405429)
    p = 0.3275911
    s = jnp.where(x < 0.0, -1.0, 1.0)
    ax = jnp.abs(x)
    # NOTE(perf): the divide adds one EUP push per element; only worth
    # switching to a divide-free erf if a bundle dump shows the single EUP
    # slot is the binding unit (at real channel counts the MXU hides it).
    t = 1.0 / (1.0 + p * ax)
    poly = ((((a5 * t + a4) * t + a3) * t + a2) * t + a1) * t
    return s * (1.0 - poly * jnp.exp(-ax * ax))


def _gelu_exact(x):
    # nn.GELU() default = erf-based GELU (not the tanh approximation).
    return 0.5 * x * (1.0 + _erf_poly(x * _INV_SQRT2))


def _conv_block_kernel(x_ref, w1_ref, b1_ref, gamma_ref, beta_ref,
                       w2_ref, b2_ref, lane_l_ref, out_ref,
                       *, K, pad, L, n_valid):
    """Shapes (BLp = B*L padded to a multiple of 128):
         x_ref:        (C_in, BLp)       conv-dtype, lane-folded (b, l)
         w1_ref:       (K, C_out, C_in)  conv-dtype (one tap per leading index)
         w2_ref:       (K, C_out, C_out) conv-dtype
         b1/b2/gamma/beta: (C_out, 1)    f32
         lane_l_ref:   (1, BLp)          int32: l for real lanes, -K sentinel
         out_ref:      (C_out, BLp)      f32
    """
    f32 = jnp.float32
    C_out, BLp = out_ref.shape
    cdt = x_ref.dtype                                   # matmul operand dtype

    lane_l = lane_l_ref[...]                            # (1, BLp) int32
    valid = jnp.where(lane_l >= 0, 1.0, 0.0)            # (1, BLp) f32

    # Per-tap source-validity masks, shared by both convs (same K / "same"
    # padding).  Tap t reads source column c + d with d = t - pad; it is valid
    # iff 0 <= l + d < L within the same batch element.  Lane-pad columns
    # carry the sentinel lane_l = -K, so l + d < 0 for every tap -> masked.
    # IMPORTANT: these masks zero exactly the columns where pltpu.roll's
    # wraparound lands, which is what makes roll a safe replacement for a
    # zero-padded shift; keep mask and roll in sync.
    tap_mask = []
    for t in range(K):
        d = t - pad
        inb = (lane_l + d >= 0) & (lane_l + d < L)
        tap_mask.append(jnp.where(inb, 1.0, 0.0).astype(cdt))

    # ---- conv1 (+bias) + GELU: K per-tap MXU matmuls into an f32 acc ----
    x = x_ref[...]                                      # (C_in, BLp)
    acc1 = jnp.zeros((C_out, BLp), f32)
    for t in range(K):
        d = t - pad
        xt = x if d == 0 else pltpu.roll(x, shift=(-d) % BLp, axis=1)
        acc1 = acc1 + jnp.dot(w1_ref[t], xt * tap_mask[t],
                              preferred_element_type=f32)
    h = _gelu_exact(acc1 + b1_ref[...])                 # (C_out, BLp) f32

    # ---- BatchNorm1d (training-mode batch stats, biased variance) ----
    # Zero the lane-pad columns so statistics only see the real B*L lanes.
    h = h * valid
    inv_n = 1.0 / float(n_valid)
    mean = jnp.sum(h, axis=1, keepdims=True) * inv_n            # (C_out, 1)
    ex2 = jnp.sum(h * h, axis=1, keepdims=True) * inv_n
    var = jnp.maximum(ex2 - mean * mean, 0.0)
    scale = gamma_ref[...] * lax.rsqrt(var + _BN_EPS)           # gamma folded
    shift = beta_ref[...] - mean * scale
    hn = (h * scale + shift).astype(cdt)                # cast ONCE before taps
    # (hn at lane-pad columns equals `shift`, but no valid output column ever
    #  sources a lane-pad column, and pad destinations are masked anyway.)

    # ---- conv2 (+bias) + GELU: K per-tap MXU matmuls, no im2col concat ----
    acc2 = jnp.zeros((C_out, BLp), f32)
    for t in range(K):
        d = t - pad
        st = hn if d == 0 else pltpu.roll(hn, shift=(-d) % BLp, axis=1)
        acc2 = acc2 + jnp.dot(w2_ref[t], st * tap_mask[t],
                              preferred_element_type=f32)
    out_ref[...] = _gelu_exact(acc2 + b2_ref[...]).astype(out_ref.dtype)


def conv_block_1d(x, params, *, kernel_size, conv_dtype=jnp.bfloat16):
    """Fused ConvBlock1D forward.  x: (B, C_in, L), PyTorch NCL layout.

    conv_dtype: operand dtype of the per-tap matmuls (accumulation is always
    f32).  bfloat16 is MXU-native on v5e/v6e/v7x and halves operand VMEM/vreg
    footprint; pass jnp.float32 to hold a ~5e-4 max-abs accuracy budget.
    """
    B, C_in, L = x.shape
    w1, b1 = params["w1"], params["b1"]
    gamma, beta = params["gamma"], params["beta"]
    w2, b2 = params["w2"], params["b2"]
    C_out = w1.shape[0]
    K = kernel_size
    pad = K // 2
    BL = B * L
    BLp = max(128, ((BL + 127) // 128) * 128)   # lane-dense: multiple of 128

    # ---- wrapper-side layout plumbing only (no compute hoisted) ----
    # x: (B, C_in, L) -> lane-folded (C_in, B*L), zero-padded to BLp lanes.
    x2d = jnp.transpose(x, (1, 0, 2)).reshape(C_in, BL).astype(conv_dtype)
    x2d = jnp.pad(x2d, ((0, 0), (0, BLp - BL)))
    # weights: (C_out, C_in, K) -> (K, C_out, C_in) so w_ref[t] is one tap.
    w1_t = jnp.transpose(w1, (2, 0, 1)).astype(conv_dtype)
    w2_t = jnp.transpose(w2, (2, 0, 1)).astype(conv_dtype)
    b1_r = b1.reshape(C_out, 1).astype(jnp.float32)
    b2_r = b2.reshape(C_out, 1).astype(jnp.float32)
    gamma_r = gamma.reshape(C_out, 1).astype(jnp.float32)
    beta_r = beta.reshape(C_out, 1).astype(jnp.float32)
    # Single int32 lane-index row (replaces the old (K, B*L) f32 mask input):
    # l = c % L for real lanes, -K sentinel for the zero-pad lanes.
    c_idx = jnp.arange(BLp, dtype=jnp.int32)
    lane_l = jnp.where(c_idx < BL, c_idx % L, jnp.int32(-K)).reshape(1, BLp)

    kernel = functools.partial(_conv_block_kernel,
                               K=K, pad=pad, L=L, n_valid=BL)
    vmem = pl.BlockSpec(memory_space=pltpu.MemorySpace.VMEM)

    # Whole problem is VMEM-resident here; set the scoped-VMEM limit with
    # headroom (v5e defaults to only 16 MiB), capped at v7x's 64 MiB physical.
    itemsize = jnp.dtype(conv_dtype).itemsize
    work_bytes = (C_in * BLp * itemsize
                  + K * C_out * (C_in + C_out) * itemsize
                  + 6 * C_out * BLp * 4 + 8 * C_out * 4 + 4 * BLp)
    vmem_limit = int(min(64 * 2 ** 20, max(32 * 2 ** 20, 8 * work_bytes)))

    out2d = pl.pallas_call(
        kernel,
        out_shape=jax.ShapeDtypeStruct((C_out, BLp), jnp.float32),
        in_specs=[vmem] * 8,
        out_specs=vmem,
        compiler_params=pltpu.CompilerParams(vmem_limit_bytes=vmem_limit),
    )(x2d, w1_t, b1_r, gamma_r, beta_r, w2_t, b2_r, lane_l)

    # Restore PyTorch NCL layout: (C_out, BLp) -> (B, C_out, L).
    return jnp.transpose(out2d[:, :BL].reshape(C_out, B, L), (1, 0, 2))


def _ref(x, params, *, kernel_size):
    """Pure-JAX reference mirroring the PyTorch module (exact erf GELU)."""
    pad = kernel_size // 2

    def conv(v, w, b):
        return lax.conv_general_dilated(
            v, w, window_strides=(1,), padding=[(pad, pad)],
            dimension_numbers=("NCH", "OIH", "NCH")) + b[None, :, None]

    gelu = lambda v: 0.5 * v * (1.0 + jax.scipy.special.erf(v * _INV_SQRT2))
    h = gelu(conv(x, params["w1"], params["b1"]))
    mean = jnp.mean(h, axis=(0, 2), keepdims=True)
    var = jnp.mean((h - mean) ** 2, axis=(0, 2), keepdims=True)
    h = (h - mean) / jnp.sqrt(var + _BN_EPS)
    h = h * params["gamma"][None, :, None] + params["beta"][None, :, None]
    return gelu(conv(h, params["w2"], params["b2"]))


if __name__ == "__main__":
    B, C_in, C_out, L, K = 2, 4, 8, 16, 5
    key = jax.random.PRNGKey(0)
    ks = jax.random.split(key, 7)
    # Deterministic synthetic parameters (shapes from ConvBlock1D.__init__).
    params = {
        "w1": jax.random.normal(ks[0], (C_out, C_in, K), jnp.float32) * 0.3,
        "b1": jax.random.normal(ks[1], (C_out,), jnp.float32) * 0.1,
        "gamma": 1.0 + 0.1 * jax.random.normal(ks[2], (C_out,), jnp.float32),
        "beta": 0.1 * jax.random.normal(ks[3], (C_out,), jnp.float32),
        "w2": jax.random.normal(ks[4], (C_out, C_out, K), jnp.float32) * 0.2,
        "b2": jax.random.normal(ks[5], (C_out,), jnp.float32) * 0.1,
    }
    x = jax.random.normal(ks[6], (B, C_in, L), jnp.float32)

    ref = _ref(x, params, kernel_size=K)

    # f32 operand path: strict accuracy gate.
    out_f32 = jax.block_until_ready(
        conv_block_1d(x, params, kernel_size=K, conv_dtype=jnp.float32))
    assert out_f32.shape == (B, C_out, L), out_f32.shape
    err32 = float(jnp.max(jnp.abs(out_f32 - ref)))
    assert err32 < 5e-4, f"f32 max abs err {err32}"

    # Default bf16 operand path (MXU-native, f32 accumulation): sanity gate.
    out_bf16 = jax.block_until_ready(conv_block_1d(x, params, kernel_size=K))
    assert out_bf16.shape == (B, C_out, L), out_bf16.shape
    err16 = float(jnp.max(jnp.abs(out_bf16 - ref)))
    assert err16 < 8e-2, f"bf16 max abs err {err16}"

    print("KERNEL_OK")
</pallas_src>

<mosaic_0001>
module attributes {stable_mosaic.version = 11 : i64} {
  func.func @_conv_block_kernel(%arg0: memref<4x128xf32, #tpu.memory_space<vmem>>, %arg1: memref<5x8x4xf32, #tpu.memory_space<vmem>>, %arg2: memref<8x1xf32, #tpu.memory_space<vmem>>, %arg3: memref<8x1xf32, #tpu.memory_space<vmem>>, %arg4: memref<8x1xf32, #tpu.memory_space<vmem>>, %arg5: memref<5x8x8xf32, #tpu.memory_space<vmem>>, %arg6: memref<8x1xf32, #tpu.memory_space<vmem>>, %arg7: memref<1x128xi32, #tpu.memory_space<vmem>>, %arg8: memref<8x128xf32, #tpu.memory_space<vmem>>) attributes {dimension_semantics = [], scalar_prefetch = 0 : i64, scratch_operands = 0 : i64, tpu.core_type = #tpu.core_type<tc>} {
    %c0 = arith.constant 0 : index
    %c0_0 = arith.constant 0 : index
    %0 = vector.load %arg7[%c0, %c0_0] : memref<1x128xi32, #tpu.memory_space<vmem>>, vector<1x128xi32>
    %c0_i32 = arith.constant 0 : i32
    %1 = vector.broadcast %c0_i32 : i32 to vector<1x128xi32>
    %2 = arith.cmpi sge, %0, %1 : vector<1x128xi32>
    %cst = arith.constant 1.000000e+00 : f32
    %cst_1 = arith.constant 0.000000e+00 : f32
    %3 = vector.broadcast %cst : f32 to vector<1x128xf32>
    %4 = vector.broadcast %cst_1 : f32 to vector<1x128xf32>
    %5 = arith.select %2, %3, %4 : vector<1x128xi1>, vector<1x128xf32>
    %c-2_i32 = arith.constant -2 : i32
    %6 = vector.broadcast %c-2_i32 : i32 to vector<1x128xi32>
    %7 = arith.addi %0, %6 : vector<1x128xi32>
    %c0_i32_2 = arith.constant 0 : i32
    %8 = vector.broadcast %c0_i32_2 : i32 to vector<1x128xi32>
    %9 = arith.cmpi sge, %7, %8 : vector<1x128xi32>
    %c-2_i32_3 = arith.constant -2 : i32
    %10 = vector.broadcast %c-2_i32_3 : i32 to vector<1x128xi32>
    %11 = arith.addi %0, %10 : vector<1x128xi32>
    %c16_i32 = arith.constant 16 : i32
    %12 = vector.broadcast %c16_i32 : i32 to vector<1x128xi32>
    %13 = arith.cmpi slt, %11, %12 : vector<1x128xi32>
    %14 = arith.andi %9, %13 : vector<1x128xi1>
    %cst_4 = arith.constant 1.000000e+00 : f32
    %cst_5 = arith.constant 0.000000e+00 : f32
    %15 = vector.broadcast %cst_4 : f32 to vector<1x128xf32>
    %16 = vector.broadcast %cst_5 : f32 to vector<1x128xf32>
    %17 = arith.select %14, %15, %16 : vector<1x128xi1>, vector<1x128xf32>
    %c-1_i32 = arith.constant -1 : i32
    %18 = vector.broadcast %c-1_i32 : i32 to vector<1x128xi32>
    %19 = arith.addi %0, %18 : vector<1x128xi32>
    %c0_i32_6 = arith.constant 0 : i32
    %20 = vector.broadcast %c0_i32_6 : i32 to vector<1x128xi32>
    %21 = arith.cmpi sge, %19, %20 : vector<1x128xi32>
    %c-1_i32_7 = arith.constant -1 : i32
    %22 = vector.broadcast %c-1_i32_7 : i32 to vector<1x128xi32>
    %23 = arith.addi %0, %22 : vector<1x128xi32>
    %c16_i32_8 = arith.constant 16 : i32
    %24 = vector.broadcast %c16_i32_8 : i32 to vector<1x128xi32>
    %25 = arith.cmpi slt, %23, %24 : vector<1x128xi32>
    %26 = arith.andi %21, %25 : vector<1x128xi1>
    %cst_9 = arith.constant 1.000000e+00 : f32
    %cst_10 = arith.constant 0.000000e+00 : f32
    %27 = vector.broadcast %cst_9 : f32 to vector<1x128xf32>
    %28 = vector.broadcast %cst_10 : f32 to vector<1x128xf32>
    %29 = arith.select %26, %27, %28 : vector<1x128xi1>, vector<1x128xf32>
    %c0_i32_11 = arith.constant 0 : i32
    %30 = vector.broadcast %c0_i32_11 : i32 to vector<1x128xi32>
    %31 = arith.addi %0, %30 : vector<1x128xi32>
    %c0_i32_12 = arith.constant 0 : i32
    %32 = vector.broadcast %c0_i32_12 : i32 to vector<1x128xi32>
    %33 = arith.cmpi sge, %31, %32 : vector<1x128xi32>
    %c0_i32_13 = arith.constant 0 : i32
    %34 = vector.broadcast %c0_i32_13 : i32 to vector<1x128xi32>
    %35 = arith.addi %0, %34 : vector<1x128xi32>
    %c16_i32_14 = arith.constant 16 : i32
    %36 = vector.broadcast %c16_i32_14 : i32 to vector<1x128xi32>
    %37 = arith.cmpi slt, %35, %36 : vector<1x128xi32>
    %38 = arith.andi %33, %37 : vector<1x128xi1>
    %cst_15 = arith.constant 1.000000e+00 : f32
    %cst_16 = arith.constant 0.000000e+00 : f32
    %39 = vector.broadcast %cst_15 : f32 to vector<1x128xf32>
    %40 = vector.broadcast %cst_16 : f32 to vector<1x128xf32>
    %41 = arith.select %38, %39, %40 : vector<1x128xi1>, vector<1x128xf32>
    %c1_i32 = arith.constant 1 : i32
    %42 = vector.broadcast %c1_i32 : i32 to vector<1x128xi32>
    %43 = arith.addi %0, %42 : vector<1x128xi32>
    %c0_i32_17 = arith.constant 0 : i32
    %44 = vector.broadcast %c0_i32_17 : i32 to vector<1x128xi32>
    %45 = arith.cmpi sge, %43, %44 : vector<1x128xi32>
    %c1_i32_18 = arith.constant 1 : i32
    %46 = vector.broadcast %c1_i32_18 : i32 to vector<1x128xi32>
    %47 = arith.addi %0, %46 : vector<1x128xi32>
    %c16_i32_19 = arith.constant 16 : i32
    %48 = vector.broadcast %c16_i32_19 : i32 to vector<1x128xi32>
    %49 = arith.cmpi slt, %47, %48 : vector<1x128xi32>
    %50 = arith.andi %45, %49 : vector<1x128xi1>
    %cst_20 = arith.constant 1.000000e+00 : f32
    %cst_21 = arith.constant 0.000000e+00 : f32
    %51 = vector.broadcast %cst_20 : f32 to vector<1x128xf32>
    %52 = vector.broadcast %cst_21 : f32 to vector<1x128xf32>
    %53 = arith.select %50, %51, %52 : vector<1x128xi1>, vector<1x128xf32>
    %c2_i32 = arith.constant 2 : i32
    %54 = vector.broadcast %c2_i32 : i32 to vector<1x128xi32>
    %55 = arith.addi %0, %54 : vector<1x128xi32>
    %c0_i32_22 = arith.constant 0 : i32
    %56 = vector.broadcast %c0_i32_22 : i32 to vector<1x128xi32>
    %57 = arith.cmpi sge, %55, %56 : vector<1x128xi32>
    %c2_i32_23 = arith.constant 2 : i32
    %58 = vector.broadcast %c2_i32_23 : i32 to vector<1x128xi32>
    %59 = arith.addi %0, %58 : vector<1x128xi32>
    %c16_i32_24 = arith.constant 16 : i32
    %60 = vector.broadcast %c16_i32_24 : i32 to vector<1x128xi32>
    %61 = arith.cmpi slt, %59, %60 : vector<1x128xi32>
    %62 = arith.andi %57, %61 : vector<1x128xi1>
    %cst_25 = arith.constant 1.000000e+00 : f32
    %cst_26 = arith.constant 0.000000e+00 : f32
    %63 = vector.broadcast %cst_25 : f32 to vector<1x128xf32>
    %64 = vector.broadcast %cst_26 : f32 to vector<1x128xf32>
    %65 = arith.select %62, %63, %64 : vector<1x128xi1>, vector<1x128xf32>
    %c0_27 = arith.constant 0 : index
    %c0_28 = arith.constant 0 : index
    %66 = vector.load %arg0[%c0_27, %c0_28] : memref<4x128xf32, #tpu.memory_space<vmem>>, vector<4x128xf32>
    %cst_29 = arith.constant 0.000000e+00 : f32
    %67 = vector.broadcast %cst_29 : f32 to vector<8x128xf32>
    %c2_i32_30 = arith.constant 2 : i32
    %68 = tpu.dynamic_rotate %66 by %c2_i32_30 dim 1 : vector<4x128xf32>, i32 -> vector<4x128xf32>
    %c0_31 = arith.constant 0 : index
    %c0_32 = arith.constant 0 : index
    %c0_33 = arith.constant 0 : index
    %69 = vector.load %arg1[%c0_31, %c0_32, %c0_33] : memref<5x8x4xf32, #tpu.memory_space<vmem>>, vector<1x8x4xf32>
    %70 = vector.shape_cast %69 : vector<1x8x4xf32> to vector<8x4xf32>
    %71 = vector.broadcast %17 : vector<1x128xf32> to vector<4x128xf32>
    %72 = arith.mulf %68, %71 : vector<4x128xf32>
    %cst_34 = arith.constant dense<0.000000e+00> : vector<8x128xf32>
    %73 = tpu.matmul %70, %72, %cst_34 {dimension_numbers = #tpu.dot_dimension_numbers<[1], [0], [0], [1], [0, 0, 1, 1], [], []>} : vector<8x4xf32>, vector<4x128xf32>, vector<8x128xf32> -> vector<8x128xf32>
    %74 = arith.addf %67, %73 : vector<8x128xf32>
    %c1_i32_35 = arith.constant 1 : i32
    %75 = tpu.dynamic_rotate %66 by %c1_i32_35 dim 1 : vector<4x128xf32>, i32 -> vector<4x128xf32>
    %c1 = arith.constant 1 : index
    %c0_36 = arith.constant 0 : index
    %c0_37 = arith.constant 0 : index
    %76 = vector.load %arg1[%c1, %c0_36, %c0_37] : memref<5x8x4xf32, #tpu.memory_space<vmem>>, vector<1x8x4xf32>
    %77 = vector.shape_cast %76 : vector<1x8x4xf32> to vector<8x4xf32>
    %78 = vector.broadcast %29 : vector<1x128xf32> to vector<4x128xf32>
    %79 = arith.mulf %75, %78 : vector<4x128xf32>
    %cst_38 = arith.constant dense<0.000000e+00> : vector<8x128xf32>
    %80 = tpu.matmul %77, %79, %cst_38 {dimension_numbers = #tpu.dot_dimension_numbers<[1], [0], [0], [1], [0, 0, 1, 1], [], []>} : vector<8x4xf32>, vector<4x128xf32>, vector<8x128xf32> -> vector<8x128xf32>
    %81 = arith.addf %74, %80 : vector<8x128xf32>
    %c2 = arith.constant 2 : index
    %c0_39 = arith.constant 0 : index
    %c0_40 = arith.constant 0 : index
    %82 = vector.load %arg1[%c2, %c0_39, %c0_40] : memref<5x8x4xf32, #tpu.memory_space<vmem>>, vector<1x8x4xf32>
    %83 = vector.shape_cast %82 : vector<1x8x4xf32> to vector<8x4xf32>
    %84 = vector.broadcast %41 : vector<1x128xf32> to vector<4x128xf32>
    %85 = arith.mulf %66, %84 : vector<4x128xf32>
    %cst_41 = arith.constant dense<0.000000e+00> : vector<8x128xf32>
    %86 = tpu.matmul %83, %85, %cst_41 {dimension_numbers = #tpu.dot_dimension_numbers<[1], [0], [0], [1], [0, 0, 1, 1], [], []>} : vector<8x4xf32>, vector<4x128xf32>, vector<8x128xf32> -> vector<8x128xf32>
    %87 = arith.addf %81, %86 : vector<8x128xf32>
    %c127_i32 = arith.constant 127 : i32
    %88 = tpu.dynamic_rotate %66 by %c127_i32 dim 1 : vector<4x128xf32>, i32 -> vector<4x128xf32>
    %c3 = arith.constant 3 : index
    %c0_42 = arith.constant 0 : index
    %c0_43 = arith.constant 0 : index
    %89 = vector.load %arg1[%c3, %c0_42, %c0_43] : memref<5x8x4xf32, #tpu.memory_space<vmem>>, vector<1x8x4xf32>
    %90 = vector.shape_cast %89 : vector<1x8x4xf32> to vector<8x4xf32>
    %91 = vector.broadcast %53 : vector<1x128xf32> to vector<4x128xf32>
    %92 = arith.mulf %88, %91 : vector<4x128xf32>
    %cst_44 = arith.constant dense<0.000000e+00> : vector<8x128xf32>
    %93 = tpu.matmul %90, %92, %cst_44 {dimension_numbers = #tpu.dot_dimension_numbers<[1], [0], [0], [1], [0, 0, 1, 1], [], []>} : vector<8x4xf32>, vector<4x128xf32>, vector<8x128xf32> -> vector<8x128xf32>
    %94 = arith.addf %87, %93 : vector<8x128xf32>
    %c126_i32 = arith.constant 126 : i32
    %95 = tpu.dynamic_rotate %66 by %c126_i32 dim 1 : vector<4x128xf32>, i32 -> vector<4x128xf32>
    %c4 = arith.constant 4 : index
    %c0_45 = arith.constant 0 : index
    %c0_46 = arith.constant 0 : index
    %96 = vector.load %arg1[%c4, %c0_45, %c0_46] : memref<5x8x4xf32, #tpu.memory_space<vmem>>, vector<1x8x4xf32>
    %97 = vector.shape_cast %96 : vector<1x8x4xf32> to vector<8x4xf32>
    %98 = vector.broadcast %65 : vector<1x128xf32> to vector<4x128xf32>
    %99 = arith.mulf %95, %98 : vector<4x128xf32>
    %cst_47 = arith.constant dense<0.000000e+00> : vector<8x128xf32>
    %100 = tpu.matmul %97, %99, %cst_47 {dimension_numbers = #tpu.dot_dimension_numbers<[1], [0], [0], [1], [0, 0, 1, 1], [], []>} : vector<8x4xf32>, vector<4x128xf32>, vector<8x128xf32> -> vector<8x128xf32>
    %101 = arith.addf %94, %100 : vector<8x128xf32>
    %c0_48 = arith.constant 0 : index
    %c0_49 = arith.constant 0 : index
    %102 = vector.load %arg2[%c0_48, %c0_49] : memref<8x1xf32, #tpu.memory_space<vmem>>, vector<8x1xf32>
    %103 = vector.broadcast %102 : vector<8x1xf32> to vector<8x128xf32>
    %104 = arith.addf %101, %103 : vector<8x128xf32>
    %cst_50 = arith.constant 5.000000e-01 : f32
    %105 = vector.broadcast %cst_50 : f32 to vector<8x128xf32>
    %106 = arith.mulf %105, %104 : vector<8x128xf32>
    %cst_51 = arith.constant 0.707106769 : f32
    %107 = vector.broadcast %cst_51 : f32 to vector<8x128xf32>
    %108 = arith.mulf %104, %107 : vector<8x128xf32>
    %cst_52 = arith.constant 0.000000e+00 : f32
    %109 = vector.broadcast %cst_52 : f32 to vector<8x128xf32>
    %110 = arith.cmpf olt, %108, %109 : vector<8x128xf32>
    %cst_53 = arith.constant -1.000000e+00 : f32
    %cst_54 = arith.constant 1.000000e+00 : f32
    %111 = vector.broadcast %cst_53 : f32 to vector<8x128xf32>
    %112 = vector.broadcast %cst_54 : f32 to vector<8x128xf32>
    %113 = arith.select %110, %111, %112 : vector<8x128xi1>, vector<8x128xf32>
    %114 = math.absf %108 : vector<8x128xf32>
    %cst_55 = arith.constant 0.327591091 : f32
    %115 = vector.broadcast %cst_55 : f32 to vector<8x128xf32>
    %116 = arith.mulf %115, %114 : vector<8x128xf32>
    %cst_56 = arith.constant 1.000000e+00 : f32
    %117 = vector.broadcast %cst_56 : f32 to vector<8x128xf32>
    %118 = arith.addf %117, %116 : vector<8x128xf32>
    %cst_57 = arith.constant 1.000000e+00 : f32
    %119 = vector.broadcast %cst_57 : f32 to vector<8x128xf32>
    %120 = arith.divf %119, %118 : vector<8x128xf32>
    %cst_58 = arith.constant 1.06140542 : f32
    %121 = vector.broadcast %cst_58 : f32 to vector<8x128xf32>
    %122 = arith.mulf %121, %120 : vector<8x128xf32>
    %cst_59 = arith.constant -1.45315206 : f32
    %123 = vector.broadcast %cst_59 : f32 to vector<8x128xf32>
    %124 = arith.addf %122, %123 : vector<8x128xf32>
    %125 = arith.mulf %124, %120 : vector<8x128xf32>
    %cst_60 = arith.constant 1.42141378 : f32
    %126 = vector.broadcast %cst_60 : f32 to vector<8x128xf32>
    %127 = arith.addf %125, %126 : vector<8x128xf32>
    %128 = arith.mulf %127, %120 : vector<8x128xf32>
    %cst_61 = arith.constant -0.284496725 : f32
    %129 = vector.broadcast %cst_61 : f32 to vector<8x128xf32>
    %130 = arith.addf %128, %129 : vector<8x128xf32>
    %131 = arith.mulf %130, %120 : vector<8x128xf32>
    %cst_62 = arith.constant 0.254829586 : f32
    %132 = vector.broadcast %cst_62 : f32 to vector<8x128xf32>
    %133 = arith.addf %131, %132 : vector<8x128xf32>
    %134 = arith.mulf %133, %120 : vector<8x128xf32>
    %cst_63 = arith.constant 0.000000e+00 : f32
    %135 = vector.broadcast %cst_63 : f32 to vector<8x128xf32>
    %136 = arith.subf %135, %114 : vector<8x128xf32>
    %137 = arith.mulf %136, %114 : vector<8x128xf32>
    %138 = math.exp %137 : vector<8x128xf32>
    %139 = arith.mulf %134, %138 : vector<8x128xf32>
    %cst_64 = arith.constant 1.000000e+00 : f32
    %140 = vector.broadcast %cst_64 : f32 to vector<8x128xf32>
    %141 = arith.subf %140, %139 : vector<8x128xf32>
    %142 = arith.mulf %113, %141 : vector<8x128xf32>
    %cst_65 = arith.constant 1.000000e+00 : f32
    %143 = vector.broadcast %cst_65 : f32 to vector<8x128xf32>
    %144 = arith.addf %143, %142 : vector<8x128xf32>
    %145 = arith.mulf %106, %144 : vector<8x128xf32>
    %146 = vector.broadcast %5 : vector<1x128xf32> to vector<8x128xf32>
    %147 = arith.mulf %145, %146 : vector<8x128xf32>
    %cst_66 = arith.constant dense<0.000000e+00> : vector<8xf32>
    %148 = vector.multi_reduction <add>, %147, %cst_66 [1] : vector<8x128xf32> to vector<8xf32>
    %149 = vector.shape_cast %148 : vector<8xf32> to vector<8x1xf32>
    %cst_67 = arith.constant 3.125000e-02 : f32
    %150 = vector.broadcast %cst_67 : f32 to vector<8x1xf32>
    %151 = arith.mulf %149, %150 : vector<8x1xf32>
    %152 = arith.mulf %147, %147 : vector<8x128xf32>
    %cst_68 = arith.constant dense<0.000000e+00> : vector<8xf32>
    %153 = vector.multi_reduction <add>, %152, %cst_68 [1] : vector<8x128xf32> to vector<8xf32>
    %154 = vector.shape_cast %153 : vector<8xf32> to vector<8x1xf32>
    %cst_69 = arith.constant 3.125000e-02 : f32
    %155 = vector.broadcast %cst_69 : f32 to vector<8x1xf32>
    %156 = arith.mulf %154, %155 : vector<8x1xf32>
    %157 = arith.mulf %151, %151 : vector<8x1xf32>
    %158 = arith.subf %156, %157 : vector<8x1xf32>
    %cst_70 = arith.constant 0.000000e+00 : f32
    %159 = vector.broadcast %cst_70 : f32 to vector<8x1xf32>
    %160 = arith.maximumf %158, %159 : vector<8x1xf32>
    %c0_71 = arith.constant 0 : index
    %c0_72 = arith.constant 0 : index
    %161 = vector.load %arg3[%c0_71, %c0_72] : memref<8x1xf32, #tpu.memory_space<vmem>>, vector<8x1xf32>
    %cst_73 = arith.constant 9.99999974E-6 : f32
    %162 = vector.broadcast %cst_73 : f32 to vector<8x1xf32>
    %163 = arith.addf %160, %162 : vector<8x1xf32>
    %164 = math.rsqrt %163 : vector<8x1xf32>
    %165 = arith.mulf %161, %164 : vector<8x1xf32>
    %c0_74 = arith.constant 0 : index
    %c0_75 = arith.constant 0 : index
    %166 = vector.load %arg4[%c0_74, %c0_75] : memref<8x1xf32, #tpu.memory_space<vmem>>, vector<8x1xf32>
    %167 = arith.mulf %151, %165 : vector<8x1xf32>
    %168 = arith.subf %166, %167 : vector<8x1xf32>
    %169 = vector.broadcast %165 : vector<8x1xf32> to vector<8x128xf32>
    %170 = arith.mulf %147, %169 : vector<8x128xf32>
    %171 = vector.broadcast %168 : vector<8x1xf32> to vector<8x128xf32>
    %172 = arith.addf %170, %171 : vector<8x128xf32>
    %cst_76 = arith.constant 0.000000e+00 : f32
    %173 = vector.broadcast %cst_76 : f32 to vector<8x128xf32>
    %c2_i32_77 = arith.constant 2 : i32
    %174 = tpu.dynamic_rotate %172 by %c2_i32_77 dim 1 : vector<8x128xf32>, i32 -> vector<8x128xf32>
    %c0_78 = arith.constant 0 : index
    %c0_79 = arith.constant 0 : index
    %c0_80 = arith.constant 0 : index
    %175 = vector.load %arg5[%c0_78, %c0_79, %c0_80] : memref<5x8x8xf32, #tpu.memory_space<vmem>>, vector<1x8x8xf32>
    %176 = vector.shape_cast %175 : vector<1x8x8xf32> to vector<8x8xf32>
    %177 = vector.broadcast %17 : vector<1x128xf32> to vector<8x128xf32>
    %178 = arith.mulf %174, %177 : vector<8x128xf32>
    %cst_81 = arith.constant dense<0.000000e+00> : vector<8x128xf32>
    %179 = tpu.matmul %176, %178, %cst_81 {dimension_numbers = #tpu.dot_dimension_numbers<[1], [0], [0], [1], [0, 0, 1, 1], [], []>} : vector<8x8xf32>, vector<8x128xf32>, vector<8x128xf32> -> vector<8x128xf32>
    %180 = arith.addf %173, %179 : vector<8x128xf32>
    %c1_i32_82 = arith.constant 1 : i32
    %181 = tpu.dynamic_rotate %172 by %c1_i32_82 dim 1 : vector<8x128xf32>, i32 -> vector<8x128xf32>
    %c1_83 = arith.constant 1 : index
    %c0_84 = arith.constant 0 : index
    %c0_85 = arith.constant 0 : index
    %182 = vector.load %arg5[%c1_83, %c0_84, %c0_85] : memref<5x8x8xf32, #tpu.memory_space<vmem>>, vector<1x8x8xf32>
    %183 = vector.shape_cast %182 : vector<1x8x8xf32> to vector<8x8xf32>
    %184 = vector.broadcast %29 : vector<1x128xf32> to vector<8x128xf32>
    %185 = arith.mulf %181, %184 : vector<8x128xf32>
    %cst_86 = arith.constant dense<0.000000e+00> : vector<8x128xf32>
    %186 = tpu.matmul %183, %185, %cst_86 {dimension_numbers = #tpu.dot_dimension_numbers<[1], [0], [0], [1], [0, 0, 1, 1], [], []>} : vector<8x8xf32>, vector<8x128xf32>, vector<8x128xf32> -> vector<8x128xf32>
    %187 = arith.addf %180, %186 : vector<8x128xf32>
    %c2_87 = arith.constant 2 : index
    %c0_88 = arith.constant 0 : index
    %c0_89 = arith.constant 0 : index
    %188 = vector.load %arg5[%c2_87, %c0_88, %c0_89] : memref<5x8x8xf32, #tpu.memory_space<vmem>>, vector<1x8x8xf32>
    %189 = vector.shape_cast %188 : vector<1x8x8xf32> to vector<8x8xf32>
    %190 = vector.broadcast %41 : vector<1x128xf32> to vector<8x128xf32>
    %191 = arith.mulf %172, %190 : vector<8x128xf32>
    %cst_90 = arith.constant dense<0.000000e+00> : vector<8x128xf32>
    %192 = tpu.matmul %189, %191, %cst_90 {dimension_numbers = #tpu.dot_dimension_numbers<[1], [0], [0], [1], [0, 0, 1, 1], [], []>} : vector<8x8xf32>, vector<8x128xf32>, vector<8x128xf32> -> vector<8x128xf32>
    %193 = arith.addf %187, %192 : vector<8x128xf32>
    %c127_i32_91 = arith.constant 127 : i32
    %194 = tpu.dynamic_rotate %172 by %c127_i32_91 dim 1 : vector<8x128xf32>, i32 -> vector<8x128xf32>
    %c3_92 = arith.constant 3 : index
    %c0_93 = arith.constant 0 : index
    %c0_94 = arith.constant 0 : index
    %195 = vector.load %arg5[%c3_92, %c0_93, %c0_94] : memref<5x8x8xf32, #tpu.memory_space<vmem>>, vector<1x8x8xf32>
    %196 = vector.shape_cast %195 : vector<1x8x8xf32> to vector<8x8xf32>
    %197 = vector.broadcast %53 : vector<1x128xf32> to vector<8x128xf32>
    %198 = arith.mulf %194, %197 : vector<8x128xf32>
    %cst_95 = arith.constant dense<0.000000e+00> : vector<8x128xf32>
    %199 = tpu.matmul %196, %198, %cst_95 {dimension_numbers = #tpu.dot_dimension_numbers<[1], [0], [0], [1], [0, 0, 1, 1], [], []>} : vector<8x8xf32>, vector<8x128xf32>, vector<8x128xf32> -> vector<8x128xf32>
    %200 = arith.addf %193, %199 : vector<8x128xf32>
    %c126_i32_96 = arith.constant 126 : i32
    %201 = tpu.dynamic_rotate %172 by %c126_i32_96 dim 1 : vector<8x128xf32>, i32 -> vector<8x128xf32>
    %c4_97 = arith.constant 4 : index
    %c0_98 = arith.constant 0 : index
    %c0_99 = arith.constant 0 : index
    %202 = vector.load %arg5[%c4_97, %c0_98, %c0_99] : memref<5x8x8xf32, #tpu.memory_space<vmem>>, vector<1x8x8xf32>
    %203 = vector.shape_cast %202 : vector<1x8x8xf32> to vector<8x8xf32>
    %204 = vector.broadcast %65 : vector<1x128xf32> to vector<8x128xf32>
    %205 = arith.mulf %201, %204 : vector<8x128xf32>
    %cst_100 = arith.constant dense<0.000000e+00> : vector<8x128xf32>
    %206 = tpu.matmul %203, %205, %cst_100 {dimension_numbers = #tpu.dot_dimension_numbers<[1], [0], [0], [1], [0, 0, 1, 1], [], []>} : vector<8x8xf32>, vector<8x128xf32>, vector<8x128xf32> -> vector<8x128xf32>
    %207 = arith.addf %200, %206 : vector<8x128xf32>
    %c0_101 = arith.constant 0 : index
    %c0_102 = arith.constant 0 : index
    %208 = vector.load %arg6[%c0_101, %c0_102] : memref<8x1xf32, #tpu.memory_space<vmem>>, vector<8x1xf32>
    %209 = vector.broadcast %208 : vector<8x1xf32> to vector<8x128xf32>
    %210 = arith.addf %207, %209 : vector<8x128xf32>
    %cst_103 = arith.constant 5.000000e-01 : f32
    %211 = vector.broadcast %cst_103 : f32 to vector<8x128xf32>
    %212 = arith.mulf %211, %210 : vector<8x128xf32>
    %cst_104 = arith.constant 0.707106769 : f32
    %213 = vector.broadcast %cst_104 : f32 to vector<8x128xf32>
    %214 = arith.mulf %210, %213 : vector<8x128xf32>
    %cst_105 = arith.constant 0.000000e+00 : f32
    %215 = vector.broadcast %cst_105 : f32 to vector<8x128xf32>
    %216 = arith.cmpf olt, %214, %215 : vector<8x128xf32>
    %cst_106 = arith.constant -1.000000e+00 : f32
    %cst_107 = arith.constant 1.000000e+00 : f32
    %217 = vector.broadcast %cst_106 : f32 to vector<8x128xf32>
    %218 = vector.broadcast %cst_107 : f32 to vector<8x128xf32>
    %219 = arith.select %216, %217, %218 : vector<8x128xi1>, vector<8x128xf32>
    %220 = math.absf %214 : vector<8x128xf32>
    %cst_108 = arith.constant 0.327591091 : f32
    %221 = vector.broadcast %cst_108 : f32 to vector<8x128xf32>
    %222 = arith.mulf %221, %220 : vector<8x128xf32>
    %cst_109 = arith.constant 1.000000e+00 : f32
    %223 = vector.broadcast %cst_109 : f32 to vector<8x128xf32>
    %224 = arith.addf %223, %222 : vector<8x128xf32>
    %cst_110 = arith.constant 1.000000e+00 : f32
    %225 = vector.broadcast %cst_110 : f32 to vector<8x128xf32>
    %226 = arith.divf %225, %224 : vector<8x128xf32>
    %cst_111 = arith.constant 1.06140542 : f32
    %227 = vector.broadcast %cst_111 : f32 to vector<8x128xf32>
    %228 = arith.mulf %227, %226 : vector<8x128xf32>
    %cst_112 = arith.constant -1.45315206 : f32
    %229 = vector.broadcast %cst_112 : f32 to vector<8x128xf32>
    %230 = arith.addf %228, %229 : vector<8x128xf32>
    %231 = arith.mulf %230, %226 : vector<8x128xf32>
    %cst_113 = arith.constant 1.42141378 : f32
    %232 = vector.broadcast %cst_113 : f32 to vector<8x128xf32>
    %233 = arith.addf %231, %232 : vector<8x128xf32>
    %234 = arith.mulf %233, %226 : vector<8x128xf32>
    %cst_114 = arith.constant -0.284496725 : f32
    %235 = vector.broadcast %cst_114 : f32 to vector<8x128xf32>
    %236 = arith.addf %234, %235 : vector<8x128xf32>
    %237 = arith.mulf %236, %226 : vector<8x128xf32>
    %cst_115 = arith.constant 0.254829586 : f32
    %238 = vector.broadcast %cst_115 : f32 to vector<8x128xf32>
    %239 = arith.addf %237, %238 : vector<8x128xf32>
    %240 = arith.mulf %239, %226 : vector<8x128xf32>
    %cst_116 = arith.constant 0.000000e+00 : f32
    %241 = vector.broadcast %cst_116 : f32 to vector<8x128xf32>
    %242 = arith.subf %241, %220 : vector<8x128xf32>
    %243 = arith.mulf %242, %220 : vector<8x128xf32>
    %244 = math.exp %243 : vector<8x128xf32>
    %245 = arith.mulf %240, %244 : vector<8x128xf32>
    %cst_117 = arith.constant 1.000000e+00 : f32
    %246 = vector.broadcast %cst_117 : f32 to vector<8x128xf32>
    %247 = arith.subf %246, %245 : vector<8x128xf32>
    %248 = arith.mulf %219, %247 : vector<8x128xf32>
    %cst_118 = arith.constant 1.000000e+00 : f32
    %249 = vector.broadcast %cst_118 : f32 to vector<8x128xf32>
    %250 = arith.addf %249, %248 : vector<8x128xf32>
    %251 = arith.mulf %212, %250 : vector<8x128xf32>
    %c0_119 = arith.constant 0 : index
    %c0_120 = arith.constant 0 : index
    %252 = vector.load %arg8[%c0_119, %c0_120] : memref<8x128xf32, #tpu.memory_space<vmem>>, vector<8x128xf32>
    tpu.vector_store %arg8[%c0_119, %c0_120], %251 {strides = array<i32>} : memref<8x128xf32, #tpu.memory_space<vmem>>, vector<8x128xf32>,
    return
  }
}

</mosaic_0001>

<bundles_post_ra>
// kernel: tpu_custom_call.1
= control target key start
LH: loop header
LB: loop body
LE: loop exit
PB: predicated region body
PF: predicated region fallthrough
CT: control target
= control target key end

     0   :  { %s1140_s29 = smov 1   ;;  %s1141_s30 = smov 127   ;;  %v1142_v1 = vmov 0.0   ;;  %vm1143_vm0 = vmmov 0   ;;  %v1146_v2 = vmov 0   ;;  %s1346_s0 = inlined_call_operand.vmem [shape: f32[4,128], index: 0, kind: input, shape index: {}]   ;;  %s1347_s1 = inlined_call_operand.vmem [shape: f32[5,8,4], index: 1, kind: input, shape index: {}]   ;;  %s1348_s2 = inlined_call_operand.vmem [shape: f32[8,1], index: 2, kind: input, shape index: {}]   ;;  %s1349_s3 = inlined_call_operand.vmem [shape: f32[8,1], index: 3, kind: input, shape index: {}]   ;;  %s1350_s4 = inlined_call_operand.vmem [shape: f32[8,1], index: 4, kind: input, shape index: {}]   ;;  %s1351_s5 = inlined_call_operand.vmem [shape: f32[5,8,8], index: 5, kind: input, shape index: {}]   ;;  %s1352_s6 = inlined_call_operand.vmem [shape: f32[8,1], index: 6, kind: input, shape index: {}]   ;;  %s1353_s7 = inlined_call_operand.vmem [shape: s32[1,128], index: 7, kind: input, shape index: {}]   ;;  %s1354_s8 = inlined_call_operand.hbm [shape: f32[8,128], index: 8, kind: output, shape index: {}]  }
   0x1   :  { %v56_v0 = vld [vmem:[%s1346_s0] sm:$0xf]  ;;  %1047 = vmatprep.subr.mxu0 %v1142_v1  ;;  %1049 = vmatprep.mubr.msk.f32.mxu0 %vm1143_vm0, %v1142_v1  ;;  %s1144_s9 = smov 2   ;;  %s1145_s0 = smov 126  }
   0x2   :  { %67 = vrot.lane.b32.xlu0 %v56_v0, %s1140_s29  ;;  %318 = vrot.lane.b32.xlu1 %v56_v0, %s1141_s30  ;;  %v494_v3 = vld [vmem:[%s1348_s2] sm:$0xff] }
   0x3   :  { %1052 = vmatprep.subr.mxu1 %v1142_v1  ;;  %1054 = vmatprep.mubr.msk.f32.mxu1 %vm1143_vm0, %v1142_v1 }
   0x4   :  { %1106 = vset.pattern.permute.xlu0 %v1146_v2  ;;  %1107 = vset.pattern.permute.xlu1 %v1146_v2 }
   0x6   :  { %57 = vrot.lane.b32.xlu0 %v56_v0, %s1144_s9  ;;  %406 = vrot.lane.b32.xlu1 %v56_v0, %s1145_s0 }
   0xa   :  { %497 = vperm.xlu0 %1106, %v494_v3  }
   0xb   :  { %13 = vsyncpa [#allocation3], 0  ;;  %v1213_v4 = vld [vmem:[%s1353_s7] sm:$0x1]  ;;  %v61_v6 = vlaneseq  ;;  %v1004_v23 = vld [vmem:[%s1347_s1 + $0x8] sm:$0xff] }
   0xc   :  { %v38_v5 = vadd.s32 4294967295, %v1213_v4  ;;  %v46_v7 = vadd.s32 1, %v1213_v4  ;;  %v33_v8 = vadd.s32 4294967294, %v1213_v4  ;;  %vm31_vm3 = vcmp.ge.s32.totalorder %v1213_v4, 0  ;;  %v59_v30 = vld [vmem:[%s1347_s1] sm:$0xff]  ;;  %v1009_v31 = vld [vmem:[%s1347_s1 + $0x10] sm:$0xff] }
   0xd   :  { %vm43_vm4 = vcmp.lt.s32.totalorder %v1213_v4, 16  ;;  %v62_v9 = vshrl.u32 %v61_v6, 7  ;;  %v51_v10 = vadd.s32 2, %v1213_v4  ;;  %v1012_v34 = vld [vmem:[%s1347_s1 + $0x18] sm:$0xff]  ;;  %v1015_v35 = vld [vmem:[%s1347_s1 + $0x20] sm:$0xff] }
   0xe   :  { %vm39_vm1 = vcmp.ge.s32.totalorder %v38_v5, 0  ;;  %vm40_vm2 = vcmp.lt.s32.totalorder %v38_v5, 16  ;;  %vm47_vm6 = vcmp.ge.s32.totalorder %v46_v7, 0  ;;  %vm48_vm7 = vcmp.lt.s32.totalorder %v46_v7, 16  ;;  %vm44_vm8 = vmand %vm31_vm3, %vm43_vm4  ;;  %v545_v4 = vld [vmem:[%s1349_s3] sm:$0xff] }
   0xf   :  { %vm41_vm5 = vmand %vm39_vm1, %vm40_vm2  ;;  %vm34_vm9 = vcmp.ge.s32.totalorder %v33_v8, 0  ;;  %vm35_vm10 = vcmp.lt.s32.totalorder %v33_v8, 16  ;;  %v1223_v11 = vsub.s32 0, %v62_v9  ;;  %vm52_vm11 = vcmp.ge.s32.totalorder %v51_v10, 0 }
  0x10   :  { %vm53_vm12 = vcmp.lt.s32.totalorder %v51_v10, 16  ;;  %v42_v12 = vsel %vm41_vm5, 1.0, %v1142_v1  ;;  %vm49_vm13 = vmand %vm47_vm6, %vm48_vm7  ;;  %v45_v13 = vsel %vm44_vm8, 1.0, %v1142_v1  ;;  %vm82_vm1 = vcmask 1043456  }
  0x11   :  { %vm36_vm14 = vmand %vm34_vm9, %vm35_vm10  ;;  %v1228_v14 = vrot.slane %v42_v12, %v1223_v11  ;;  %v1231_v15 = vrot.slane %v45_v13, %v1223_v11  ;;  %v50_v17 = vsel %vm49_vm13, 1.0, %v1142_v1  ;;  %vm78_vm2 = vcmask 31744  }
  0x12   :  { %vm54_vm15 = vmand %vm52_vm11, %vm53_vm12  ;;  %v37_v16 = vsel %vm36_vm14, 1.0, %v1142_v1  ;;  %v1245_v25 = vrot.slane %v50_v17, %v1223_v11  ;;  %v1147_v10 = vmov 1.0   ;;  %v32_v13 = vsel %vm31_vm3, 1.0, %v1142_v1 }
  0x13   :  { %v55_v18 = vsel %vm54_vm15, 1.0, %v1142_v1  ;;  %v1238_v22 = vrot.slane %v37_v16, %v1223_v11  ;;  %v240_v24 = vmul.f32 %v1231_v15, %v56_v0  ;;  %vm573_vm3 = vcmask 64512  }
  0x14   :  { %v1248_v26 = vrot.slane %v55_v18, %v1223_v11 }
  0x74   :  { %v68_v19 = vpop.permute.xlu0 %67  ;;  %v319_v20 = vpop.permute.xlu1 %318 }
  0x75   :  { %v77_v21 = vmul.f32 %v1228_v14, %v68_v19  ;;  %v328_v32 = vmul.f32 %v1245_v25, %v319_v20  ;;  %v532_v19 = vrot.slane %v32_v13, %v1223_v11 }
  0x77   :  { %1048 = vmatpush3.msk.msra.mxu0 %vm82_vm1, %v77_v21 }
  0x78   :  { %v58_v27 = vpop.permute.xlu0 %57  ;;  %1050 = vmatmul.mubr.msk.f32.vlgmr.msra.gmra.mxu0 %vm78_vm2, %v1004_v23  ;;  %1057 = vmatprep.subr.mxu0 %v1142_v1  ;;  %v407_v28 = vpop.permute.xlu1 %406 }
  0x79   :  { %v66_v29 = vmul.f32 %v1238_v22, %v58_v27  ;;  %1058 = vmatpush3.msk.msra.mxu0 %vm82_vm1, %v240_v24  ;;  %1059 = vmatprep.mubr.msk.f32.mxu0 %vm1143_vm0, %v1142_v1  ;;  %v416_v33 = vmul.f32 %v1248_v26, %v407_v28 }
  0x7a   :  { %1067 = vmatprep.subr.mxu0 %v1142_v1 }
  0x7b   :  { %1053 = vmatpush3.msk.msra.mxu1 %vm82_vm1, %v66_v29 }
  0x7c   :  { %1055 = vmatmul.mubr.msk.f32.vlgmr.msra.gmra.mxu1 %vm78_vm2, %v59_v30  ;;  %1060 = vmatmul.mubr.msk.f32.vlgmr.msra.gmra.mxu0 %vm78_vm2, %v1009_v31 }
  0x7d   :  { %1062 = vmatprep.subr.mxu1 %v1142_v1  ;;  %1064 = vmatprep.mubr.msk.f32.mxu1 %vm1143_vm0, %v1142_v1 }
  0x7e   :  { %1063 = vmatpush3.msk.msra.mxu1 %vm82_vm1, %v328_v32  ;;  %1068 = vmatpush3.msk.msra.mxu0 %vm82_vm1, %v416_v33 }
  0x7f   :  { %1069 = vmatprep.mubr.msk.f32.mxu0 %vm1143_vm0, %v1142_v1  ;;  %1072 = vmatprep.subr.mxu1 %v1142_v1 }
  0x80   :  { %1065 = vmatmul.mubr.msk.f32.vlgmr.msra.gmra.mxu1 %vm78_vm2, %v1012_v34  ;;  %1070 = vmatmul.mubr.msk.f32.vlgmr.msra.gmra.mxu0 %vm78_vm2, %v1015_v35  ;;  %v549_v35 = vld [vmem:[%s1350_s4] sm:$0xff] }
  0x81   :  { %1074 = vmatprep.mubr.msk.f32.mxu1 %vm1143_vm0, %v1142_v1  ;;  %1077 = vmatprep.subr.mxu0 %v1142_v1 }
  0x82   :  { %1079 = vmatprep.mubr.msk.f32.mxu0 %vm1143_vm0, %v1142_v1 }
  0x85   :  { %v498_v47 = vpop.permute.xlu0 %497 }
 0x138   :  { %v152_v36 = vpop.f32.mrf.mxu0 }
 0x13a   :  { %v1051_v37 = vpop.f32.mrf.mxu0 }
 0x13c   :  { %v228_v38 = vpop.f32.mrf.mxu1  ;;  %v313_v39 = vpop.f32.mrf.mxu0 }
 0x13d   :  { %v229_v40 = vadd.f32 %v228_v38, %v152_v36 }
 0x13e   :  { %v1056_v41 = vpop.f32.mrf.mxu1  ;;  %v1061_v42 = vpop.f32.mrf.mxu0 }
 0x13f   :  { %v317_v43 = vadd.f32 %v313_v39, %v229_v40  ;;  %v955_v42 = vld [vmem:[%s1352_s6] sm:$0xff] }
 0x140   :  { %v401_v44 = vpop.f32.mrf.mxu1  ;;  %v489_v45 = vpop.f32.mrf.mxu0 }
 0x141   :  { %v405_v46 = vadd.f32 %v401_v44, %v317_v43 }
 0x142   :  { %v1066_v48 = vpop.f32.mrf.mxu1  ;;  %v1071_v49 = vpop.f32.mrf.mxu0 }
 0x143   :  { %v493_v50 = vadd.f32 %v489_v45, %v405_v46  ;;  %v1018_v45 = vld [vmem:[%s1351_s5 + $0x8] sm:$0xff] }
 0x145   :  { %v500_v51 = vadd.f32 %v498_v47, %v493_v50 }
 0x147   :  { %v502_v52 = vmul.f32 0.70710677, %v500_v51  ;;  %v501_v17 = vmul.f32 0.5, %v500_v51 }
 0x149   :  { %v505_v53 = vand.u32 2147483647, %v502_v52  ;;  %vm503_vm4 = vcmp.lt.f32.partialorder %v502_v52, 0.0  ;;  %v1023_v52 = vld [vmem:[%s1351_s5 + $0x18] sm:$0xff] }
 0x14a   :  { %v504_v12 = vsel %vm503_vm4, -1.0, %v1147_v10 }
 0x14b   :  { %v506_v54 = vmul.f32 0.3275911, %v505_v53  ;;  %v519_v56 = vsub.f32 0.0, %v505_v53 }
 0x14d   :  { %v507_v55 = vadd.f32 1.0, %v506_v54  ;;  %v520_v57 = vmul.f32 %v519_v56, %v505_v53 }
 0x14f   :  { %1108 = vrcp.f32 %v507_v55  ;;  %v521_v60 = vmul.f32 1.442695, %v520_v57 }
 0x151   :  { %1110 = vpow2.f32 %v521_v60 }
 0x15c   :  { %v1109_v58 = vpop.eup %1108 }
 0x15d   :  { %v510_v59 = vmul.f32 1.0614054, %v1109_v58 }
 0x15e   :  { %v1111_v7 = vpop.eup %1110 }
 0x15f   :  { %v511_v61 = vadd.f32 -1.4531521, %v510_v59 }
 0x161   :  { %v512_v62 = vmul.f32 %v1109_v58, %v511_v61 }
 0x163   :  { %v513_v63 = vadd.f32 1.4214138, %v512_v62 }
 0x165   :  { %v514_v0 = vmul.f32 %v1109_v58, %v513_v63 }
 0x167   :  { %v515_v2 = vadd.f32 -0.28449672, %v514_v0 }
 0x169   :  { %v516_v3 = vmul.f32 %v1109_v58, %v515_v2 }
 0x16b   :  { %v517_v5 = vadd.f32 0.2548296, %v516_v3 }
 0x16d   :  { %v518_v6 = vmul.f32 %v1109_v58, %v517_v5 }
 0x16f   :  { %v523_v8 = vmul.f32 %v1111_v7, %v518_v6 }
 0x171   :  { %v524_v9 = vsub.f32 1.0, %v523_v8 }
 0x173   :  { %v525_v16 = vmul.f32 %v524_v9, %v504_v12 }
 0x175   :  { %v526_v18 = vadd.f32 1.0, %v525_v16 }
 0x177   :  { %v527_v20 = vmul.f32 %v526_v18, %v501_v17 }
 0x179   :  { %v534_v21 = vmul.f32 %v532_v19, %v527_v20 }
 0x17b   :  { %535 = vadd.xlane.f32.xlu1 %v534_v21  ;;  %v538_v23 = vmul.f32 %v534_v21, %v534_v21 }
 0x17d   :  { %539 = vadd.xlane.f32.xlu0 %v538_v23 }
 0x204   :  { %v536_v24 = vpop.xlane.xlu1 %535 }
 0x205   :  { %v537_v27 = vmul.f32 0.03125, %v536_v24 }
 0x206   :  { %v540_v28 = vpop.xlane.xlu0 %539 }
 0x207   :  { %v542_v29 = vmul.f32 %v537_v27, %v537_v27  ;;  %v541_v30 = vmul.f32 0.03125, %v540_v28 }
 0x209   :  { %v543_v31 = vsub.f32 %v541_v30, %v542_v29 }
 0x20b   :  { %v544_v32 = vmax.f32 %v543_v31, 0.0 }
 0x20d   :  { %v546_v33 = vadd.f32 1e-05, %v544_v32 }
 0x20f   :  { %1112 = vrsqrt.f32 %v546_v33 }
 0x21c   :  { %v1113_v34 = vpop.eup %1112 }
 0x21d   :  { %v548_v11 = vmul.f32 %v1113_v34, %v545_v4 }
 0x21f   :  { %554 = vperm.xlu1 %1107, %v548_v11   ;;  %v550_v36 = vmul.f32 %v548_v11, %v537_v27 }
 0x221   :  { %v551_v37 = vsub.f32 %v549_v35, %v550_v36 }
 0x223   :  { %560 = vperm.xlu0 %1106, %v551_v37  }
 0x29a   :  { %v555_v38 = vpop.permute.xlu1 %554 }
 0x29b   :  { %v557_v39 = vmul.f32 %v555_v38, %v534_v21 }
 0x29e   :  { %v561_v40 = vpop.permute.xlu0 %560 }
 0x29f   :  { %v563_v41 = vadd.f32 %v561_v40, %v557_v39 }
 0x2a1   :  { %797 = vrot.lane.b32.xlu0 %v563_v41, %s1141_s30  ;;  %568 = vrot.lane.b32.xlu1 %v563_v41, %s1140_s29  ;;  %v722_v46 = vmul.f32 %v563_v41, %v1231_v15  ;;  %v1021_v15 = vld [vmem:[%s1351_s5 + $0x10] sm:$0xff] }
 0x2a5   :  { %958 = vperm.xlu0 %1106, %v955_v42   ;;  %564 = vrot.lane.b32.xlu1 %v563_v41, %s1144_s9 }
 0x2a9   :  { %876 = vrot.lane.b32.xlu1 %v563_v41, %s1145_s0 }
 0x313   :  { %v569_v43 = vpop.permute.xlu1 %568  ;;  %v798_v47 = vpop.permute.xlu0 %797 }
 0x314   :  { %v572_v44 = vmul.f32 %v569_v43, %v1228_v14  ;;  %v566_v14 = vld [vmem:[%s1351_s5] sm:$0xff]  ;;  %v801_v50 = vmul.f32 %v798_v47, %v1245_v25 }
 0x315   :  { %v1025_v25 = vld [vmem:[%s1351_s5 + $0x20] sm:$0xff]  ;;  %s1148_s5 = smov [#allocation2]  }
 0x316   :  { %1073 = vmatpush3.msra.mxu1 %v572_v44  ;;  %s996_s11 = sshll.u32 %s1148_s5, 4  ;;  %s997_s11 = int_to_ptr.vmem [resolvable:$true] %s996_s11 }
 0x317   :  { %1082 = vmatprep.subr.mxu1 %v1142_v1  ;;  %v565_v48 = vpop.permute.xlu1 %564  ;;  %1075 = vmatmul.mubr.msk.f32.vlgmr.msra.gmra.mxu1 %vm573_vm3, %v1018_v45  ;;  %s1118_s12 = scalar_lea.vmem %s997_s11, 128  ;;  %p1123_p1 = scmp.lt.s32.totalorder %s997_s11, %s997_s11 }
 0x318   :  { %v567_v49 = vmul.f32 %v565_v48, %v1238_v22  ;;  %1083 = vmatpush3.msra.mxu1 %v722_v46  ;;  %1084 = vmatprep.mubr.msk.f32.mxu1 %vm1143_vm0, %v1142_v1  ;;  %p1119_p0 = scmp.ne.s32.totalorder %s997_s11, %s1118_s12  ;;  %p1124_p2 = scmp.lt.s32.totalorder %s1118_s12, %s1118_s12 }
 0x319   :  { %1092 = vmatprep.subr.mxu1 %v1142_v1 }
 0x31a   :  { %1078 = vmatpush3.msra.mxu0 %v567_v49  ;;  %p1125_p3 = por %p1124_p2, %p1123_p1 }
 0x31b   :  { %1080 = vmatmul.mubr.msk.f32.vlgmr.msra.gmra.mxu0 %vm573_vm3, %v566_v14  ;;  %1087 = vmatprep.subr.mxu0 %v1142_v1  ;;  %v877_v22 = vpop.permute.xlu1 %876 }
 0x31c   :  { %v880_v51 = vmul.f32 %v877_v22, %v1248_v26  ;;  %1088 = vmatpush3.msra.mxu0 %v801_v50  ;;  %1085 = vmatmul.mubr.msk.f32.vlgmr.msra.gmra.mxu1 %vm573_vm3, %v1021_v15  ;;  %p1126_p4 = pnand %p1125_p3, %p1119_p0 }
 0x31d   :  { %1089 = vmatprep.mubr.msk.f32.mxu0 %vm1143_vm0, %v1142_v1  ;;  %1094 = vmatprep.mubr.msk.f32.mxu1 %vm1143_vm0, %v1142_v1 }
 0x31e   :  { %1093 = vmatpush3.msra.mxu1 %v880_v51 }
 0x31f   :  { %1090 = vmatmul.mubr.msk.f32.vlgmr.msra.gmra.mxu0 %vm573_vm3, %v1023_v52 }
 0x320   :  { %1095 = vmatmul.mubr.msk.f32.vlgmr.msra.gmra.mxu1 %vm573_vm3, %v1025_v25  ;;  %v959_v2 = vpop.permute.xlu0 %958 }
 0x3d7   :  { %v643_v26 = vpop.f32.mrf.mxu1 }
 0x3d9   :  { %v1076_v53 = vpop.f32.mrf.mxu1 }
 0x3db   :  { %v716_v54 = vpop.f32.mrf.mxu0 }
 0x3dc   :  { %v717_v55 = vadd.f32 %v716_v54, %v643_v26  ;;  %v792_v56 = vpop.f32.mrf.mxu1 }
 0x3dd   :  { %v1081_v57 = vpop.f32.mrf.mxu0 }
 0x3de   :  { %v796_v58 = vadd.f32 %v792_v56, %v717_v55  ;;  %v1086_v59 = vpop.f32.mrf.mxu1 }
 0x3df   :  { %v871_v60 = vpop.f32.mrf.mxu0 }
 0x3e0   :  { %v875_v61 = vadd.f32 %v871_v60, %v796_v58  ;;  %v950_v1 = vpop.f32.mrf.mxu1 }
 0x3e1   :  { %v1091_v62 = vpop.f32.mrf.mxu0 }
 0x3e2   :  { %v954_v63 = vadd.f32 %v950_v1, %v875_v61  ;;  %v1096_v0 = vpop.f32.mrf.mxu1 }
 0x3e4   :  { %v961_v3 = vadd.f32 %v959_v2, %v954_v63 }
 0x3e6   :  { %v963_v5 = vmul.f32 0.70710677, %v961_v3  ;;  %v962_v4 = vmul.f32 0.5, %v961_v3 }
 0x3e8   :  { %v966_v6 = vand.u32 2147483647, %v963_v5  ;;  %vm964_vm0 = vcmp.lt.f32.partialorder %v963_v5, 0.0 }
 0x3e9   :  { %v965_v32 = vsel %vm964_vm0, -1.0, %v1147_v10 }
 0x3ea   :  { %v967_v7 = vmul.f32 0.3275911, %v966_v6  ;;  %v980_v9 = vsub.f32 0.0, %v966_v6 }
 0x3ec   :  { %v968_v8 = vadd.f32 1.0, %v967_v7  ;;  %v981_v12 = vmul.f32 %v980_v9, %v966_v6 }
 0x3ee   :  { %1114 = vrcp.f32 %v968_v8  ;;  %v982_v16 = vmul.f32 1.442695, %v981_v12 }
 0x3f0   :  { %1116 = vpow2.f32 %v982_v16 }
 0x3fb   :  { %v1115_v13 = vpop.eup %1114 }
 0x3fc   :  { %v971_v17 = vmul.f32 1.0614054, %v1115_v13 }
 0x3fd   :  { %v1117_v29 = vpop.eup %1116 }
 0x3fe   :  { %v972_v18 = vadd.f32 -1.4531521, %v971_v17 }
 0x400   :  { %v973_v19 = vmul.f32 %v1115_v13, %v972_v18 }
 0x402   :  { %v974_v20 = vadd.f32 1.4214138, %v973_v19 }
 0x404   :  { %v975_v21 = vmul.f32 %v1115_v13, %v974_v20 }
 0x406   :  { %v976_v23 = vadd.f32 -0.28449672, %v975_v21 }
 0x408   :  { %v977_v24 = vmul.f32 %v1115_v13, %v976_v23 }
 0x40a   :  { %v978_v27 = vadd.f32 0.2548296, %v977_v24 }
 0x40c   :  { %v979_v28 = vmul.f32 %v1115_v13, %v978_v27 }
 0x40e   :  { %v984_v30 = vmul.f32 %v1117_v29, %v979_v28 }
 0x410   :  { %v985_v31 = vsub.f32 1.0, %v984_v30 }
 0x412   :  { %v986_v33 = vmul.f32 %v985_v31, %v965_v32 }
 0x414   :  { %v987_v34 = vadd.f32 1.0, %v986_v33 }
 0x416   :  { %v988_v11 = vmul.f32 %v987_v34, %v962_v4 }
 0x418   :  { %989 = vst [vmem:[#allocation2] sm:$0xff] %v988_v11 }
 0x419   :  { %1129 = shalt.err (!%p1126_p4)
}
 0x41a   :  { %999 = dma.vmem_to_hbm [thread:$0]  %s997_s11, 128, %s1354_s8, [#allocation3]  }
 0x41b   :  { %1138 = dma.done.wait [#allocation3], 128  }
 0x41c   :  { %1139 = vsyncadd [#allocation3], 4294967168 }
 0x41d   :  { %1003 = vsyncpa [#allocation3], 1 }

</bundles_post_ra>
